<compile_context>
chip_gen: v5e
topology: v5e:2x2
jax: 0.10.0
libtpu: 0.0.40
codegen_flags: <defaults>
</compile_context>

<pallas_src>
import jax
import jax.numpy as jnp
from jax import lax
from jax.experimental import pallas as pl
from jax.experimental.pallas import tpu as pltpu


def _round_up(a, b):
    return (a + b - 1) // b * b


def _softmax_pad_kernel(w_ref, out_ref):
    # w_ref: (1, m) logits with -inf in slot 0  ->  out_ref: (1, m) probabilities,
    # exactly equal to concat([0], softmax(W)) because exp(-inf) == 0.
    w = w_ref[...]
    w_max = jnp.max(w, axis=1, keepdims=True)
    e = jnp.exp(w - w_max)
    denom = jnp.sum(e, axis=1, keepdims=True)
    out_ref[...] = e * pl.reciprocal(denom, approx=False)  # exact: runs once, off the hot path


def _lookup_kernel(x_ref, w_ref, out_ref):
    # x_ref: (n, bb) int8 bits   w_ref: (m, 1) f32 table   out_ref: (1, bb) f32
    n, bb = x_ref.shape
    m = w_ref.shape[0]

    # idx[b] = sum_i x[i, b] << i   (integer path, reduce over the sublane axis)
    xb = x_ref[...].astype(jnp.int32)                                   # (n, bb)
    bitpos = lax.broadcasted_iota(jnp.int32, (n, bb), 0)                # (n, bb)
    idx = jnp.sum(jnp.left_shift(xb, bitpos), axis=0, keepdims=True)    # (1, bb) int32

    # Gather w_full[idx] as a one-hot select + sublane reduction:
    # table broadcast along lanes, compare against a sublane iota, sum over sublanes.
    sub = lax.broadcasted_iota(jnp.int32, (m, bb), 0)                   # (m, bb)
    onehot = sub == idx                                                 # (m, bb) bool
    picked = jnp.where(onehot, w_ref[...], 0.0)                         # (m, bb) f32
    out_ref[...] = jnp.sum(picked, axis=0, keepdims=True)               # (1, bb)


def simple_forward(W, x, *, block_batch=None):
    """W: (2^n - 1,) f32 logits, x: (batch, n) 0/1 bits (any int dtype) -> (batch,) f32."""
    batch, n = x.shape
    m = 1 << n
    assert W.shape == (m - 1,), (W.shape, m)

    # --- softmax with prepended 0 probability, computed once in its own tiny kernel ---
    w_pad = jnp.concatenate(
        [jnp.full((1,), -jnp.inf, dtype=jnp.float32), W.astype(jnp.float32)]
    ).reshape(1, m)
    w_full = pl.pallas_call(
        _softmax_pad_kernel,
        out_shape=jax.ShapeDtypeStruct((1, m), jnp.float32),
    )(w_pad)
    w_col = w_full.reshape(m, 1)  # table held as (m, 1): broadcast along lanes in-kernel

    # --- lane-dense batch tiling ---
    if block_batch is None:
        block_batch = min(_round_up(batch, 128), 1024)
    assert block_batch % 128 == 0, block_batch
    padded = _round_up(batch, block_batch)

    # batch on lanes, bits on sublanes, int8 to cut the dominant HBM stream;
    # zero padding maps to idx 0 -> probability 0, sliced off below.
    xt = jnp.pad(x.astype(jnp.int8).T, ((0, 0), (0, padded - batch)))   # (n, padded)

    out = pl.pallas_call(
        _lookup_kernel,
        out_shape=jax.ShapeDtypeStruct((1, padded), jnp.float32),
        grid=(padded // block_batch,),
        in_specs=[
            pl.BlockSpec((n, block_batch), lambda i: (0, i)),   # x bits tile
            pl.BlockSpec((m, 1), lambda i: (0, 0)),             # probability table (shared)
        ],
        out_specs=pl.BlockSpec((1, block_batch), lambda i: (0, i)),
        compiler_params=pltpu.CompilerParams(
            dimension_semantics=("parallel",)),                 # megacore sharding on v7x
    )(xt, w_col)
    return out[0, :batch]


if __name__ == "__main__":
    n, batch = 8, 16
    m = 1 << n
    key = jax.random.PRNGKey(0)
    kw, kx = jax.random.split(key)

    # Deterministic parameter init matching the PyTorch __init__ (x=None branch):
    # W = randn(2^n - 1).
    W = jax.random.normal(kw, (m - 1,), dtype=jnp.float32)
    # Binary input bits x (batch, n).
    x = jax.random.bernoulli(kx, 0.5, (batch, n)).astype(jnp.int32)

    y = simple_forward(W, x)
    y = jax.block_until_ready(y)

    # Pure-JAX reference.
    w_soft = jax.nn.softmax(W)
    w_full = jnp.concatenate([jnp.zeros((1,), jnp.float32), w_soft])
    weights = jnp.left_shift(1, jnp.arange(n, dtype=jnp.int32))
    idx = jnp.sum(x * weights, axis=1)
    ref = w_full[idx]

    assert y.shape == (batch,)
    assert jnp.allclose(y, ref, atol=1e-5, rtol=1e-5), (y, ref)
    print("KERNEL_OK")
</pallas_src>

<mosaic_0001>
module attributes {stable_mosaic.version = 11 : i64} {
  func.func @_softmax_pad_kernel(%arg0: memref<1x256xf32, #tpu.memory_space<vmem>>, %arg1: memref<1x256xf32, #tpu.memory_space<vmem>>) attributes {dimension_semantics = [], scalar_prefetch = 0 : i64, scratch_operands = 0 : i64, tpu.core_type = #tpu.core_type<tc>} {
    %c0 = arith.constant 0 : index
    %c0_0 = arith.constant 0 : index
    %0 = vector.load %arg0[%c0, %c0_0] : memref<1x256xf32, #tpu.memory_space<vmem>>, vector<1x256xf32>
    %cst = arith.constant dense<0xFF800000> : vector<1xf32>
    %1 = vector.multi_reduction <maximumf>, %0, %cst [1] : vector<1x256xf32> to vector<1xf32>
    %2 = vector.shape_cast %1 : vector<1xf32> to vector<1x1xf32>
    %3 = vector.broadcast %2 : vector<1x1xf32> to vector<1x256xf32>
    %4 = arith.subf %0, %3 : vector<1x256xf32>
    %5 = math.exp %4 : vector<1x256xf32>
    %cst_1 = arith.constant dense<0.000000e+00> : vector<1xf32>
    %6 = vector.multi_reduction <add>, %5, %cst_1 [1] : vector<1x256xf32> to vector<1xf32>
    %7 = vector.shape_cast %6 : vector<1xf32> to vector<1x1xf32>
    %8 = tpu.reciprocal %7 : vector<1x1xf32> -> vector<1x1xf32>
    %9 = vector.broadcast %8 : vector<1x1xf32> to vector<1x256xf32>
    %10 = arith.mulf %5, %9 : vector<1x256xf32>
    %c0_2 = arith.constant 0 : index
    %c0_3 = arith.constant 0 : index
    %11 = vector.load %arg1[%c0_2, %c0_3] : memref<1x256xf32, #tpu.memory_space<vmem>>, vector<1x256xf32>
    tpu.vector_store %arg1[%c0_2, %c0_3], %10 {strides = array<i32>} : memref<1x256xf32, #tpu.memory_space<vmem>>, vector<1x256xf32>,
    return
  }
}

</mosaic_0001>

<bundles_post_ra>
// kernel: tpu_custom_call.1
= control target key start
LH: loop header
LB: loop body
LE: loop exit
PB: predicated region body
PF: predicated region fallthrough
CT: control target
= control target key end

     0   :  { %6 = vsyncpa [#allocation3], 0  ;;  %s171_s0 = inlined_call_operand.hbm [shape: f32[1,256], index: 0, kind: input, shape index: {}]   ;;  %s172_s1 = inlined_call_operand.hbm [shape: f32[1,256], index: 1, kind: output, shape index: {}]  }
   0x1   :  { %7 = vsyncpa [#allocation4], 0  ;;  %s13_s8 = sshll.u32 %s171_s0, 4  ;;  %s149_s9 = smov [#allocation2]   ;;  %s14_s8 = int_to_ptr.hbm [resolvable:$true] %s13_s8 }
   0x2   :  { %s15_s10 = sshll.u32 %s149_s9, 4  ;;  %s16_s10 = int_to_ptr.vmem [resolvable:$true] %s15_s10 }
   0x3   :  { %18 = dma.hbm_to_vmem [thread:$0]  %s14_s8, 32, %s16_s10, [#allocation3]  }
   0x4   :  { %145 = dma.done.wait [#allocation3], 32  }
   0x5   :  { %146 = vsyncadd [#allocation3], 4294967264  ;;  %v23_v0 = vld [vmem:[#allocation2] sm:$0x3]  ;;  %vm29_vm0 = vcmask 1040384   ;;  %v69_v25 = vlaneseq  ;;  %s150_s0 = smov [#allocation5]  }
   0x6   :  { %v25_v1 = vperm.slane %v23_v0, 0  ;;  %v26_v2 = vperm.slane %v23_v0, 1  ;;  %s79_s11 = sshll.u32 %s150_s0, 4  ;;  %s81_s14 = sshll.u32 %s172_s1, 4  ;;  %s80_s11 = int_to_ptr.vmem [resolvable:$true] %s79_s11  ;;  %s82_s14 = int_to_ptr.hbm [resolvable:$true] %s81_s14 }
   0x7   :  { %vm71_vm5 = vcmp.lt.s32.totalorder %v69_v25, 256 }
   0x8   :  { %v30_v3 = vsel %vm29_vm0, %v25_v1, -inf  ;;  %v31_v4 = vsel %vm29_vm0, %v26_v2, -inf }
   0x9   :  { %v32_v5 = vmax.f32 %v30_v3, %v31_v4 }
   0xb   :  { %33 = vmax.xlane.f32.xlu0 %v32_v5 }
  0x7e   :  { %v34_v6 = vpop.xlane.xlu0 %33 }
  0x7f   :  { %v36_v7 = vperm.slane %v34_v6, 0 }
  0x81   :  { %v38_v8 = vsub.f32 %v23_v0, %v36_v7 }
  0x83   :  { %v39_v9 = vmul.f32 1.442695, %v38_v8 }
  0x85   :  { %93 = vpow2.f32 %v39_v9 }
  0x8b   :  { %v94_v10 = vpop.eup %93 }
  0x8c   :  { %v42_v11 = vperm.slane %v94_v10, 0  ;;  %v43_v12 = vperm.slane %v94_v10, 1 }
  0x8e   :  { %v46_v13 = vsel %vm29_vm0, %v42_v11, 0.0  ;;  %v47_v14 = vsel %vm29_vm0, %v43_v12, 0.0 }
  0x8f   :  { %v48_v15 = vadd.f32 %v47_v14, %v46_v13 }
  0x91   :  { %49 = vadd.xlane.f32.xlu0 %v48_v15 }
 0x104   :  { %v50_v16 = vpop.xlane.xlu0 %49 }
 0x105   :  { %95 = vrcp.f32 %v50_v16  ;;  %v62_v20 = vand.u32 2147483648, %v50_v16  ;;  %v60_v22 = vand.u32 2147483647, %v50_v16  ;;  %vm56_vm2 = vweird.f32 %v50_v16 }
 0x107   :  { %v63_v24 = vor.u32 1.1754944e-38, %v62_v20  ;;  %vm61_vm4 = vcmp.eq.f32.partialorder %v60_v22, 8.507059e+37 }
 0x10b   :  { %v96_v17 = vpop.eup %95 }
 0x10c   :  { %v52_v18 = vmul.f32 %v96_v17, %v50_v16  ;;  %vm57_vm1 = vweird.f32 %v96_v17 }
 0x10d   :  { %vm58_vm3 = vmor %vm56_vm2, %vm57_vm1 }
 0x10e   :  { %v53_v19 = vsub.f32 1.0, %v52_v18 }
 0x110   :  { %v54_v21 = vmul.f32 %v96_v17, %v53_v19 }
 0x112   :  { %v55_v23 = vadd.f32 %v96_v17, %v54_v21 }
 0x114   :  { %v59_v26 = vsel %vm58_vm3, %v96_v17, %v55_v23 }
 0x115   :  { %v64_v27 = vsel %vm61_vm4, %v63_v24, %v59_v26 }
 0x116   :  { %v66_v28 = vperm.slane %v64_v27, 0 }
 0x118   :  { %v68_v29 = vmul.f32 %v94_v10, %v66_v28 }
 0x11a   :  { %73 = vst.msk [vmem:[#allocation5] sm:$0x3] %vm71_vm5, %v68_v29 }
 0x11b   :  { %84 = dma.vmem_to_hbm [thread:$0]  %s80_s11, 32, %s82_s14, [#allocation4]  }
 0x11c   :  { %147 = dma.done.wait [#allocation4], 32  }
 0x11d   :  { %148 = vsyncadd [#allocation4], 4294967264 }
 0x11e   :  { %89 = vsyncpa [#allocation3], 1 }
 0x11f   :  { %90 = vsyncpa [#allocation4], 1 }

</bundles_post_ra>
